<compile_context>
chip_gen: v6e
topology: v6e:2x2x1
jax: 0.10.0
libtpu: 0.0.40
codegen_flags: <defaults>
</compile_context>

<pallas_src>
import jax
import jax.numpy as jnp
from jax.experimental import pallas as pl
from jax.experimental.pallas import tpu as pltpu

LANE = 128      # TPU vreg lane width
SUBLANE = 8     # f32 sublane width


def _round_up(n, m):
    return ((n + m - 1) // m) * m


def regressionnet_kernel(x_ref,
                         w1_ref, b1_ref,
                         w2_ref, b2_ref,
                         w3_ref, b3_ref,
                         w4_ref, b4_ref,
                         o_ref):
    """One batch tile: fused 4-layer MLP. Matmuls hit the MXU (bf16 in, f32 acc);
    bias + LeakyReLU epilogue runs on the VPU in f32."""

    def leaky_relu(h):  # negative_slope = 0.01, computed in f32
        return jnp.where(h > 0, h, 0.01 * h)

    x = x_ref[...]                                            # (TB, Fin_p) bf16

    h = jnp.dot(x, w1_ref[...], preferred_element_type=jnp.float32) + b1_ref[...]
    h = leaky_relu(h)
    # TODO(synk): nn.Dropout(p=0.5) is identity at inference time; a training-mode
    # stochastic mask would use pltpu.prng_seed + pltpu.prng_random_bits here.

    h = jnp.dot(h.astype(jnp.bfloat16), w2_ref[...],
                preferred_element_type=jnp.float32) + b2_ref[...]
    h = leaky_relu(h)

    h = jnp.dot(h.astype(jnp.bfloat16), w3_ref[...],
                preferred_element_type=jnp.float32) + b3_ref[...]
    h = leaky_relu(h)

    out = jnp.dot(h.astype(jnp.bfloat16), w4_ref[...],
                  preferred_element_type=jnp.float32) + b4_ref[...]
    o_ref[...] = out.astype(o_ref.dtype)


def pack_params(params):
    """Zero-pad every feature dim to a multiple of 128 (lane-dense) and pre-cast
    weights to bf16 (stored once, not re-converted per call). Biases stay f32."""
    packed = []
    for w, b in params:
        fi, fo = w.shape
        fi_p, fo_p = _round_up(fi, LANE), _round_up(fo, LANE)
        w_p = jnp.zeros((fi_p, fo_p), jnp.bfloat16).at[:fi, :fo].set(
            w.astype(jnp.bfloat16))
        b_p = jnp.zeros((1, fo_p), jnp.float32).at[0, :fo].set(
            b.astype(jnp.float32))
        packed.append((w_p, b_p))
    return tuple(packed)


def regressionnet_forward(x, packed_params, out_size, *, block_batch=256):
    (w1, b1), (w2, b2), (w3, b3), (w4, b4) = packed_params
    B, fin = x.shape
    fin_p = w1.shape[0]
    out_p = w4.shape[1]

    # Batch tile: multiple of the f32 sublane (8), capped at the (padded) batch.
    tb = _round_up(min(block_batch, _round_up(B, SUBLANE)), SUBLANE)
    num_tiles = int(pl.cdiv(B, tb))
    b_pad = num_tiles * tb

    # Zero-pad batch/features; pre-cast x to bf16 (halves the x-tile DMA bytes).
    x_p = jnp.zeros((b_pad, fin_p), jnp.bfloat16).at[:B, :fin].set(
        x.astype(jnp.bfloat16))

    flops = 2 * b_pad * (w1.shape[0] * w1.shape[1] + w2.shape[0] * w2.shape[1]
                         + w3.shape[0] * w3.shape[1] + w4.shape[0] * w4.shape[1])
    bytes_accessed = (int(x_p.size) * 2 + b_pad * out_p * 4
                      + sum(int(w.size) * 2 + int(b.size) * 4
                            for w, b in packed_params))

    out = pl.pallas_call(
        regressionnet_kernel,
        out_shape=jax.ShapeDtypeStruct((b_pad, out_p), jnp.float32),
        grid=(num_tiles,),
        in_specs=[
            pl.BlockSpec((tb, fin_p), lambda i: (i, 0)),   # x: tiled over batch
            pl.BlockSpec(w1.shape, lambda i: (0, 0)),      # weights/biases stay
            pl.BlockSpec(b1.shape, lambda i: (0, 0)),      # VMEM-resident across
            pl.BlockSpec(w2.shape, lambda i: (0, 0)),      # all batch tiles
            pl.BlockSpec(b2.shape, lambda i: (0, 0)),
            pl.BlockSpec(w3.shape, lambda i: (0, 0)),
            pl.BlockSpec(b3.shape, lambda i: (0, 0)),
            pl.BlockSpec(w4.shape, lambda i: (0, 0)),
            pl.BlockSpec(b4.shape, lambda i: (0, 0)),
        ],
        out_specs=pl.BlockSpec((tb, out_p), lambda i: (i, 0)),
        compiler_params=pltpu.CompilerParams(
            dimension_semantics=("parallel",),      # v7x megacore shards batch tiles
            vmem_limit_bytes=32 * 1024 * 1024,      # explicit; safe on v5e/v6e/v7x
        ),
        cost_estimate=pl.CostEstimate(
            flops=int(flops), transcendentals=0,
            bytes_accessed=int(bytes_accessed)),
    )(x_p, w1, b1, w2, b2, w3, b3, w4, b4)

    # Strip batch + lane padding (padded output columns are exactly zero).
    return out[:B, :out_size]


def init_linear(key, fan_in, fan_out):
    # Mirrors nn.Linear's uniform(-1/sqrt(fan_in), 1/sqrt(fan_in)) init.
    kw, kb = jax.random.split(key)
    bound = 1.0 / (fan_in ** 0.5)
    w = jax.random.uniform(kw, (fan_in, fan_out), jnp.float32, -bound, bound)
    b = jax.random.uniform(kb, (fan_out,), jnp.float32, -bound, bound)
    return w, b


def ref_forward(x, params):
    # Pure-JAX reference using the same bf16-matmul / f32-epilogue recipe.
    # Dropout is identity in inference mode.
    h = x.astype(jnp.bfloat16)
    n = len(params)
    for idx, (w, b) in enumerate(params):
        h = jnp.dot(h, w.astype(jnp.bfloat16),
                    preferred_element_type=jnp.float32) + b[None, :]
        if idx < n - 1:
            h = jnp.where(h > 0, h, 0.01 * h).astype(jnp.bfloat16)
    return h


if __name__ == "__main__":
    # Small shapes consistent with RegressionNet(input_size, h1, h2, h3, out, seed).
    batch = 48
    input_size, hidden1, hidden2, hidden3, output_size = 32, 64, 64, 32, 8

    key = jax.random.PRNGKey(0)
    k_x, k1, k2, k3, k4 = jax.random.split(key, 5)

    x = jax.random.normal(k_x, (batch, input_size), jnp.float32)
    params = (
        init_linear(k1, input_size, hidden1),
        init_linear(k2, hidden1, hidden2),
        init_linear(k3, hidden2, hidden3),
        init_linear(k4, hidden3, output_size),
    )

    packed = pack_params(params)
    # block_batch=16 -> 3 "parallel" batch tiles at this toy size (prod default 256).
    out = regressionnet_forward(x, packed, output_size, block_batch=16)
    out = jax.block_until_ready(out)

    expected = ref_forward(x, params)
    assert out.shape == (batch, output_size)
    assert jnp.allclose(out, expected, atol=2e-2, rtol=2e-2), (
        float(jnp.max(jnp.abs(out - expected))))

    print("KERNEL_OK")
</pallas_src>

<mosaic_0001>
module attributes {stable_mosaic.version = 11 : i64} {
  func.func @regressionnet_kernel(%arg0: i32, %arg1: memref<16x128xbf16, #tpu.memory_space<vmem>>, %arg2: memref<128x128xbf16, #tpu.memory_space<vmem>>, %arg3: memref<1x128xf32, #tpu.memory_space<vmem>>, %arg4: memref<128x128xbf16, #tpu.memory_space<vmem>>, %arg5: memref<1x128xf32, #tpu.memory_space<vmem>>, %arg6: memref<128x128xbf16, #tpu.memory_space<vmem>>, %arg7: memref<1x128xf32, #tpu.memory_space<vmem>>, %arg8: memref<128x128xbf16, #tpu.memory_space<vmem>>, %arg9: memref<1x128xf32, #tpu.memory_space<vmem>>, %arg10: memref<16x128xf32, #tpu.memory_space<vmem>>) attributes {dimension_semantics = [#tpu.dimension_semantics<parallel>], iteration_bounds = array<i64: 3>, scalar_prefetch = 0 : i64, scratch_operands = 0 : i64, tpu.core_type = #tpu.core_type<tc>, window_params = [{transform_indices = @transform_0, window_bounds = array<i64: 16, 128>}, {pipeline_mode = #tpu.pipeline_mode<synchronous>, transform_indices = @transform_1, window_bounds = array<i64: 128, 128>}, {pipeline_mode = #tpu.pipeline_mode<synchronous>, transform_indices = @transform_2, window_bounds = array<i64: 1, 128>}, {pipeline_mode = #tpu.pipeline_mode<synchronous>, transform_indices = @transform_3, window_bounds = array<i64: 128, 128>}, {pipeline_mode = #tpu.pipeline_mode<synchronous>, transform_indices = @transform_4, window_bounds = array<i64: 1, 128>}, {pipeline_mode = #tpu.pipeline_mode<synchronous>, transform_indices = @transform_5, window_bounds = array<i64: 128, 128>}, {pipeline_mode = #tpu.pipeline_mode<synchronous>, transform_indices = @transform_6, window_bounds = array<i64: 1, 128>}, {pipeline_mode = #tpu.pipeline_mode<synchronous>, transform_indices = @transform_7, window_bounds = array<i64: 128, 128>}, {pipeline_mode = #tpu.pipeline_mode<synchronous>, transform_indices = @transform_8, window_bounds = array<i64: 1, 128>}, {transform_indices = @transform_9, window_bounds = array<i64: 16, 128>}]} {
    %c0 = arith.constant 0 : index
    %c0_0 = arith.constant 0 : index
    %0 = vector.load %arg1[%c0, %c0_0] : memref<16x128xbf16, #tpu.memory_space<vmem>>, vector<16x128xbf16>
    %c0_1 = arith.constant 0 : index
    %c0_2 = arith.constant 0 : index
    %1 = vector.load %arg2[%c0_1, %c0_2] : memref<128x128xbf16, #tpu.memory_space<vmem>>, vector<128x128xbf16>
    %cst = arith.constant dense<0.000000e+00> : vector<16x128xf32>
    %2 = tpu.matmul %0, %1, %cst {dimension_numbers = #tpu.dot_dimension_numbers<[1], [0], [0], [1], [0, 0, 1, 1], [], []>} : vector<16x128xbf16>, vector<128x128xbf16>, vector<16x128xf32> -> vector<16x128xf32>
    %c0_3 = arith.constant 0 : index
    %c0_4 = arith.constant 0 : index
    %3 = vector.load %arg3[%c0_3, %c0_4] : memref<1x128xf32, #tpu.memory_space<vmem>>, vector<1x128xf32>
    %4 = vector.broadcast %3 : vector<1x128xf32> to vector<16x128xf32>
    %5 = arith.addf %2, %4 : vector<16x128xf32>
    %cst_5 = arith.constant 0.000000e+00 : f32
    %6 = vector.broadcast %cst_5 : f32 to vector<16x128xf32>
    %7 = arith.cmpf ogt, %5, %6 : vector<16x128xf32>
    %cst_6 = arith.constant 0.00999999977 : f32
    %8 = vector.broadcast %cst_6 : f32 to vector<16x128xf32>
    %9 = arith.mulf %8, %5 : vector<16x128xf32>
    %10 = arith.select %7, %5, %9 : vector<16x128xi1>, vector<16x128xf32>
    %11 = arith.truncf %10 : vector<16x128xf32> to vector<16x128xbf16>
    %c0_7 = arith.constant 0 : index
    %c0_8 = arith.constant 0 : index
    %12 = vector.load %arg4[%c0_7, %c0_8] : memref<128x128xbf16, #tpu.memory_space<vmem>>, vector<128x128xbf16>
    %cst_9 = arith.constant dense<0.000000e+00> : vector<16x128xf32>
    %13 = tpu.matmul %11, %12, %cst_9 {dimension_numbers = #tpu.dot_dimension_numbers<[1], [0], [0], [1], [0, 0, 1, 1], [], []>} : vector<16x128xbf16>, vector<128x128xbf16>, vector<16x128xf32> -> vector<16x128xf32>
    %c0_10 = arith.constant 0 : index
    %c0_11 = arith.constant 0 : index
    %14 = vector.load %arg5[%c0_10, %c0_11] : memref<1x128xf32, #tpu.memory_space<vmem>>, vector<1x128xf32>
    %15 = vector.broadcast %14 : vector<1x128xf32> to vector<16x128xf32>
    %16 = arith.addf %13, %15 : vector<16x128xf32>
    %cst_12 = arith.constant 0.000000e+00 : f32
    %17 = vector.broadcast %cst_12 : f32 to vector<16x128xf32>
    %18 = arith.cmpf ogt, %16, %17 : vector<16x128xf32>
    %cst_13 = arith.constant 0.00999999977 : f32
    %19 = vector.broadcast %cst_13 : f32 to vector<16x128xf32>
    %20 = arith.mulf %19, %16 : vector<16x128xf32>
    %21 = arith.select %18, %16, %20 : vector<16x128xi1>, vector<16x128xf32>
    %22 = arith.truncf %21 : vector<16x128xf32> to vector<16x128xbf16>
    %c0_14 = arith.constant 0 : index
    %c0_15 = arith.constant 0 : index
    %23 = vector.load %arg6[%c0_14, %c0_15] : memref<128x128xbf16, #tpu.memory_space<vmem>>, vector<128x128xbf16>
    %cst_16 = arith.constant dense<0.000000e+00> : vector<16x128xf32>
    %24 = tpu.matmul %22, %23, %cst_16 {dimension_numbers = #tpu.dot_dimension_numbers<[1], [0], [0], [1], [0, 0, 1, 1], [], []>} : vector<16x128xbf16>, vector<128x128xbf16>, vector<16x128xf32> -> vector<16x128xf32>
    %c0_17 = arith.constant 0 : index
    %c0_18 = arith.constant 0 : index
    %25 = vector.load %arg7[%c0_17, %c0_18] : memref<1x128xf32, #tpu.memory_space<vmem>>, vector<1x128xf32>
    %26 = vector.broadcast %25 : vector<1x128xf32> to vector<16x128xf32>
    %27 = arith.addf %24, %26 : vector<16x128xf32>
    %cst_19 = arith.constant 0.000000e+00 : f32
    %28 = vector.broadcast %cst_19 : f32 to vector<16x128xf32>
    %29 = arith.cmpf ogt, %27, %28 : vector<16x128xf32>
    %cst_20 = arith.constant 0.00999999977 : f32
    %30 = vector.broadcast %cst_20 : f32 to vector<16x128xf32>
    %31 = arith.mulf %30, %27 : vector<16x128xf32>
    %32 = arith.select %29, %27, %31 : vector<16x128xi1>, vector<16x128xf32>
    %33 = arith.truncf %32 : vector<16x128xf32> to vector<16x128xbf16>
    %c0_21 = arith.constant 0 : index
    %c0_22 = arith.constant 0 : index
    %34 = vector.load %arg8[%c0_21, %c0_22] : memref<128x128xbf16, #tpu.memory_space<vmem>>, vector<128x128xbf16>
    %cst_23 = arith.constant dense<0.000000e+00> : vector<16x128xf32>
    %35 = tpu.matmul %33, %34, %cst_23 {dimension_numbers = #tpu.dot_dimension_numbers<[1], [0], [0], [1], [0, 0, 1, 1], [], []>} : vector<16x128xbf16>, vector<128x128xbf16>, vector<16x128xf32> -> vector<16x128xf32>
    %c0_24 = arith.constant 0 : index
    %c0_25 = arith.constant 0 : index
    %36 = vector.load %arg9[%c0_24, %c0_25] : memref<1x128xf32, #tpu.memory_space<vmem>>, vector<1x128xf32>
    %37 = vector.broadcast %36 : vector<1x128xf32> to vector<16x128xf32>
    %38 = arith.addf %35, %37 : vector<16x128xf32>
    %c0_26 = arith.constant 0 : index
    %c0_27 = arith.constant 0 : index
    %39 = vector.load %arg10[%c0_26, %c0_27] : memref<16x128xf32, #tpu.memory_space<vmem>>, vector<16x128xf32>
    tpu.vector_store %arg10[%c0_26, %c0_27], %38 {strides = array<i32>} : memref<16x128xf32, #tpu.memory_space<vmem>>, vector<16x128xf32>,
    return
  }
  func.func @transform_0(%arg0: i32) -> (i32, i32) {
    %c0_i32 = arith.constant 0 : i32
    %c0_i32_0 = arith.constant 0 : i32
    return %arg0, %c0_i32 : i32, i32
  }
  func.func @transform_1(%arg0: i32) -> (i32, i32) {
    %c0_i32 = arith.constant 0 : i32
    %c0_i32_0 = arith.constant 0 : i32
    %c0_i32_1 = arith.constant 0 : i32
    return %c0_i32, %c0_i32_0 : i32, i32
  }
  func.func @transform_2(%arg0: i32) -> (i32, i32) {
    %c0_i32 = arith.constant 0 : i32
    %c0_i32_0 = arith.constant 0 : i32
    %c0_i32_1 = arith.constant 0 : i32
    return %c0_i32, %c0_i32_0 : i32, i32
  }
  func.func @transform_3(%arg0: i32) -> (i32, i32) {
    %c0_i32 = arith.constant 0 : i32
    %c0_i32_0 = arith.constant 0 : i32
    %c0_i32_1 = arith.constant 0 : i32
    return %c0_i32, %c0_i32_0 : i32, i32
  }
  func.func @transform_4(%arg0: i32) -> (i32, i32) {
    %c0_i32 = arith.constant 0 : i32
    %c0_i32_0 = arith.constant 0 : i32
    %c0_i32_1 = arith.constant 0 : i32
    return %c0_i32, %c0_i32_0 : i32, i32
  }
  func.func @transform_5(%arg0: i32) -> (i32, i32) {
    %c0_i32 = arith.constant 0 : i32
    %c0_i32_0 = arith.constant 0 : i32
    %c0_i32_1 = arith.constant 0 : i32
    return %c0_i32, %c0_i32_0 : i32, i32
  }
  func.func @transform_6(%arg0: i32) -> (i32, i32) {
    %c0_i32 = arith.constant 0 : i32
    %c0_i32_0 = arith.constant 0 : i32
    %c0_i32_1 = arith.constant 0 : i32
    return %c0_i32, %c0_i32_0 : i32, i32
  }
  func.func @transform_7(%arg0: i32) -> (i32, i32) {
    %c0_i32 = arith.constant 0 : i32
    %c0_i32_0 = arith.constant 0 : i32
    %c0_i32_1 = arith.constant 0 : i32
    return %c0_i32, %c0_i32_0 : i32, i32
  }
  func.func @transform_8(%arg0: i32) -> (i32, i32) {
    %c0_i32 = arith.constant 0 : i32
    %c0_i32_0 = arith.constant 0 : i32
    %c0_i32_1 = arith.constant 0 : i32
    return %c0_i32, %c0_i32_0 : i32, i32
  }
  func.func @transform_9(%arg0: i32) -> (i32, i32) {
    %c0_i32 = arith.constant 0 : i32
    %c0_i32_0 = arith.constant 0 : i32
    return %arg0, %c0_i32 : i32, i32
  }
}

</mosaic_0001>

<bundles_post_ra>
// kernel: tpu_custom_call.1
= control target key start
LH: loop header
LB: loop body
LE: loop exit
PB: predicated region body
PF: predicated region fallthrough
CT: control target
= control target key end

     0   :  { %s1864_s0 = inlined_call_operand.hbm [shape: bf16[48,128], index: 0, kind: input, shape index: {}]   ;;  %s1865_s1 = inlined_call_operand.hbm [shape: bf16[128,128], index: 1, kind: input, shape index: {}]   ;;  %s1866_s2 = inlined_call_operand.vmem [shape: f32[1,128], index: 2, kind: input, shape index: {}]   ;;  %s1867_s3 = inlined_call_operand.hbm [shape: bf16[128,128], index: 3, kind: input, shape index: {}]   ;;  %s1868_s4 = inlined_call_operand.vmem [shape: f32[1,128], index: 4, kind: input, shape index: {}]   ;;  %s1869_s5 = inlined_call_operand.hbm [shape: bf16[128,128], index: 5, kind: input, shape index: {}]   ;;  %s1870_s6 = inlined_call_operand.vmem [shape: f32[1,128], index: 6, kind: input, shape index: {}]   ;;  %s1871_s7 = inlined_call_operand.hbm [shape: bf16[128,128], index: 7, kind: input, shape index: {}]   ;;  %s1872_s8 = inlined_call_operand.vmem [shape: f32[1,128], index: 8, kind: input, shape index: {}]   ;;  %s1873_s9 = inlined_call_operand.hbm [shape: f32[48,128], index: 9, kind: output, shape index: {}]  }
   0x1   :  { %1880 = sst [smem:[#allocation16_spill]] %s1865_s1 }
   0x2   :  { %1881 = sst [smem:[#allocation17_spill]] %s1867_s3 }
   0x3   :  { %1882 = sst [smem:[#allocation18_spill]] %s1869_s5 }
   0x4   :  { %14 = vsyncpa [#allocation3], 0 }
   0x5   :  { %16 = vsyncpa [#allocation3 + $0x1], 0 }
   0x6   :  { %17 = vsyncpa [#allocation6], 0 }
   0x7   :  { %18 = vsyncpa [#allocation9], 0 }
   0x8   :  { %19 = vsyncpa [#allocation4], 0 }
   0x9   :  { %21 = vsyncpa [#allocation4 + $0x1], 0  ;;  %s1587_s30 = smov 0   ;;  %s1589_s10 = smov 0  }
   0xa   :  { %s1591_s11 = smov 0   ;;  %s1593_s12 = smov 0  }
   0xb LB: > { %s1608_s13 = sadd.s32 4294967295, %s1523_s12   ;;  %s1016_s14 = sadd.s32 4294967294, %s1523_s12   ;;  %s1523_s12 = sphi %s1593_s12, %s1905_s12   ;;  %s1519_s11 = sphi %s1591_s11, %s1904_s11   ;;  %s1515_s10 = sphi %s1589_s10, %s1903_s10   ;;  %s1511_s30 = sphi %s1587_s30, %s1902_s30  }
   0xc   : > { %p47_p0 = scmp.ne.s32.totalorder %s1515_s10, %s1511_s30  ;;  %p1874_p1 = scmp.eq.s32.totalorder %s1608_s13, 0 }
   0xd   : > { %p239_p2 = scmp.eq.s32.totalorder %s1608_s13, 2  ;;  %p245_p3 = scmp.eq.s32.totalorder %s1016_s14, 2 }
   0xe   : > { %p1617_p4 = por %p1874_p1, %p47_p0  ;;  %p1017_p5 = scmp.ge.s32.totalorder %s1523_s12, 1 }
   0xf   : > { %p1622_p6 = por %p245_p3, %p47_p0  ;;  %p252_p7 = scmp.lt.s32.totalorder %s1523_s12, 4 }
  0x10   : > { %s1883_s15 = scalar_select %p1617_p4, 1, 0 }
  0x11   : > { %s1884_s16 = scalar_select %p1622_p6, 1, 0 }
  0x12   : > { %p1627_p8 = pnand %p1017_p5, %p252_p7  ;;  %s1525_s18 = smov [#allocation5]  }
  0x13   : > { %s264_s19 = sshll.u32 %s1525_s18, 4  ;;  %s1526_s21 = smov [#allocation8]   ;;  %s265_s19 = int_to_ptr.vmem [resolvable:$true] %s264_s19 }
  0x14   : > { %s1885_s17 = scalar_select %p1627_p8, 1, 0 }
  0x15   : > { %p1213_p9 = pneg %p1627_p8  ;;  %s296_s22 = sshll.u32 %s1526_s21, 4  ;;  %s297_s22 = int_to_ptr.vmem [resolvable:$true] %s296_s22 }
  0x16   : > { %s1527_s23 = smov [#allocation7]   ;;  %s1330_s25 = scalar_lea.vmem %s265_s19, 1024 }
  0x17   : > { %p1635_p10 = pnand %p1213_p9, %p1874_p1  ;;  %s280_s24 = sshll.u32 %s1527_s23, 4  ;;  %s281_s24 = int_to_ptr.vmem [resolvable:$true] %s280_s24 }
  0x18   : > { %p1331_p12 = scmp.ne.s32.totalorder %s265_s19, %s1330_s25  ;;  %p1338_p3 = scmp.lt.s32.totalorder %s265_s19, %s265_s19 }
  0x19   : > { %p1321_p11 = pneg %p1635_p10  ;;  %p1339_p5 = scmp.lt.s32.totalorder %s1330_s25, %s1330_s25 }
  0x1b   : > { %p1333_p13 = pnand %p1331_p12, %p1321_p11  ;;  %p1340_p7 = por %p1339_p5, %p1338_p3 }
  0x1d   : > { %p1334_p0 = pneg %p1333_p13 }
  0x1f   : > { %p1341_p9 = pnand %p1340_p7, %p1334_p0 }
  0x21   : > { %1344 = shalt.err (!%p1341_p9)
}
  0x22   : > { %s1875_s26 = smov 64   ;;  %s1876_s27 = smov 4  }
  0x23   : > { %s1887_s1 = sld [smem:[#allocation16_spill]]  ;;  %s1356_s14 = scalar_lea.vmem %s297_s22, 1024 }
  0x24   : > { %p1357_p12 = scmp.ne.s32.totalorder %s297_s22, %s1356_s14  ;;  %p1364_p0 = scmp.lt.s32.totalorder %s297_s22, %s297_s22 }
  0x25   : > { %p1365_p5 = scmp.lt.s32.totalorder %s1356_s14, %s1356_s14 }
  0x26   : > { %p1359_p13 = pnand %p1357_p12, %p1321_p11 }
  0x27   : > { %p1366_p7 = por %p1365_p5, %p1364_p0 }
  0x28   : > { %p1360_p3 = pneg %p1359_p13 }
  0x29   : > { %1216 = dma.hbm_to_vmem [thread:$0]  (!%p1635_p10), %s1887_s1, 1024, %s265_s19, [#allocation6], %s1875_s26, %s1875_s26, %s1876_s27  }
  0x2a   : > { %p1367_p9 = pnand %p1366_p7, %p1360_p3 }
  0x2c   : > { %1370 = shalt.err (!%p1367_p9)
}
  0x2d   : > { %s1888_s5 = sld [smem:[#allocation18_spill]]  ;;  %s1382_s19 = scalar_lea.vmem %s281_s24, 1024 }
  0x2e   : > { %p1383_p1 = scmp.ne.s32.totalorder %s281_s24, %s1382_s19  ;;  %p1390_p0 = scmp.lt.s32.totalorder %s281_s24, %s281_s24 }
  0x2f   : > { %p1391_p3 = scmp.lt.s32.totalorder %s1382_s19, %s1382_s19 }
  0x30   : > { %p1385_p12 = pnand %p1383_p1, %p1321_p11 }
  0x31   : > { %p1392_p5 = por %p1391_p3, %p1390_p0 }
  0x32   : > { %p1386_p13 = pneg %p1385_p12 }
  0x33   : > { %1222 = dma.hbm_to_vmem [thread:$0]  (!%p1635_p10), %s1888_s5, 1024, %s297_s22, [#allocation9], %s1875_s26, %s1875_s26, %s1876_s27  }
  0x34   : > { %p1393_p7 = pnand %p1392_p5, %p1386_p13 }
  0x36   : > { %1396 = shalt.err (!%p1393_p7)
}
  0x37   : > { %s1889_s3 = sld [smem:[#allocation17_spill]]  ;;  %s1530_s22 = smov [#allocation10]  }
  0x38   : > { %s312_s28 = sshll.u32 %s1530_s22, 4  ;;  %s313_s28 = int_to_ptr.vmem [resolvable:$true] %s312_s28 }
  0x39   : > { %s1408_s29 = scalar_lea.vmem %s313_s28, 1024  ;;  %p1416_p13 = scmp.lt.s32.totalorder %s313_s28, %s313_s28 }
  0x3a   : > { %p1409_p1 = scmp.ne.s32.totalorder %s313_s28, %s1408_s29  ;;  %p1417_p0 = scmp.lt.s32.totalorder %s1408_s29, %s1408_s29 }
  0x3c   : > { %p1411_p9 = pnand %p1409_p1, %p1321_p11  ;;  %p1418_p3 = por %p1417_p0, %p1416_p13 }
  0x3d   : > { %1219 = dma.hbm_to_vmem [thread:$0]  (!%p1635_p10), %s1889_s3, 1024, %s281_s24, [#allocation6], %s1875_s26, %s1875_s26, %s1876_s27  }
  0x3e   : > { %p1412_p12 = pneg %p1411_p9 }
  0x40   : > { %p1419_p5 = pnand %p1418_p3, %p1412_p12 }
  0x42   : > { %1422 = shalt.err (!%p1419_p5)
}
  0x43   : > { %1225 = dma.hbm_to_vmem [thread:$0]  (!%p1635_p10), %s1871_s7, 1024, %s313_s28, [#allocation9], %s1875_s26, %s1875_s26, %s1876_s27  }
  0x44   : > { %s1686_s18 = sadd.s32 1, %s1523_s12   ;;  %s34_s20 = sadd.s32 1, %s1519_s11 }
  0x45   : > { %s31_s21 = ssub.s32 %s1523_s12, %s1686_s18  ;;  %p41_p11 = scmp.ne.s32.totalorder %s1519_s11, %s1515_s10 }
  0x46   : > { %p32_p7 = scmp.eq.s32.totalorder %s31_s21, 0  ;;  %p42_p1 = scmp.eq.s32.totalorder %s1523_s12, 0 }
  0x47   : > { %p1696_p9 = por %p239_p2, %p41_p11  ;;  %p1238_p12 = scmp.lt.s32.totalorder %s1523_s12, 3 }
  0x48   : > { %s1702_s23 = scalar_select %p32_p7, %s1519_s11, %s34_s20  }
  0x49   : > { %s1890_s19 = scalar_select %p1696_p9, 1, 0 }
  0x4a   : > { %p43_p13 = por %p42_p1, %p41_p11  ;;  %s329_s25 = sand.u32 1, %s1519_s11  }
  0x4b   : > { %s1023_s22 = sshll.u32 %s329_s25, 3  ;;  %s1075_s28 = sshll.u32 %s1523_s12, 7 }
  0x4c   : > { %s1709_s14 = scalar_lea.hbm %s1864_s0, %s1075_s28  ;;  %s333_s21 = scalar_lea.vmem [#allocation2], %s1023_s22 }
  0x4d   : > { %s340_s26 = sshll.u32 %s333_s21, 4  ;;  %p1713_p2 = pnand %p1238_p12, %p43_p13  ;;  %s1711_s26 = int_to_ptr.vmem [resolvable:$true] %s340_s26 }
  0x4e   : > { %s1717_s20 = scalar_lea.sflag [#allocation3], %s329_s25  ;;  %s1423_s1 = scalar_lea.hbm %s1709_s14, 128 }
  0x4f   : > { %p1424_p10 = scmp.ne.s32.totalorder %s1709_s14, %s1423_s1  ;;  %p1425_p0 = pneg %p1713_p2 }
  0x50   : > { %s1428_s22 = scalar_lea.hbm %s1864_s0, 384  ;;  %p1429_p11 = scmp.lt.s32.totalorder %s1709_s14, %s1864_s0 }
  0x51   : > { %p1426_p3 = pnand %p1425_p0, %p1424_p10  ;;  %p1430_p7 = scmp.lt.s32.totalorder %s1428_s22, %s1423_s1 }
  0x53   : > { %p1427_p5 = pneg %p1426_p3  ;;  %p1431_p1 = por %p1430_p7, %p1429_p11 }
  0x55   : > { %p1432_p12 = pnand %p1431_p1, %p1427_p5 }
  0x57   : > { %1435 = shalt.err (!%p1432_p12)
}
  0x58   : > { %s1436_s25 = scalar_lea.vmem %s1711_s26, 128  ;;  %s1531_s3 = smov [#allocation2]  }
  0x59   : > { %p1437_p13 = scmp.ne.s32.totalorder %s1711_s26, %s1436_s25  ;;  %s1441_s5 = sshll.u32 %s1531_s3, 4  ;;  %s1442_s5 = int_to_ptr.vmem [resolvable:$false] %s1441_s5 }
  0x5a   : > { %s1443_s28 = scalar_lea.vmem %s1442_s5, 256  ;;  %p1444_p3 = scmp.lt.s32.totalorder %s1711_s26, %s1442_s5 }
  0x5b   : > { %p1439_p6 = pnand %p1437_p13, %p1425_p0  ;;  %p1445_p9 = scmp.lt.s32.totalorder %s1443_s28, %s1436_s25 }
  0x5d   : > { %p1440_p10 = pneg %p1439_p6  ;;  %p1446_p4 = por %p1445_p9, %p1444_p3 }
  0x5f   : > { %p1447_p8 = pnand %p1446_p4, %p1440_p10 }
  0x61   : > { %1450 = shalt.err (!%p1447_p8)
}
  0x62   : > { %s1892_s1 = smov 4   ;;  %s1893_s29 = smov 64  }
  0x63   : > { %1229 = dma.hbm_to_vmem [thread:$0]  (!%p1713_p2), %s1709_s14, 128, %s1711_s26, %s1717_s20, %s1893_s29, %s1893_s29, %s1892_s1  }
  0x64   : > { %p1894_p6 = scmp.ne.s32.totalorder %s1885_s17, 0 }
  0x65   : > { %s1744_s3 = sand.u32 (!%p1894_p6), 1, %s1515_s10   ;;  %p1895_p4 = scmp.ne.s32.totalorder (!%p1894_p6), %s1883_s15, 0 }
  0x66   : > { %352 = sbr.rel (%p1894_p6) target bundleno = 973 (0x3cd), region = 56  ;;  %s1027_s5 = sshll.u32 (!%p1894_p6), %s1744_s3, 3 }
  0x67   : > { %s355_s22 = scalar_lea.sflag (!%p1894_p6), [#allocation3], %s1744_s3  ;;  %s1748_s24 = scalar_lea.vmem (!%p1894_p6), [#allocation2], %s1027_s5 }
  0x6b   : > { %1494 = dma.done.wait (%p1895_p4), %s355_s22, 128  }
  0x6c   : > { %1496 = vsyncadd (%p1895_p4), %s355_s22, 4294967168  ;;  %p1896_p8 = scmp.eq.s32.totalorder %s1608_s13, 0 }
  0x6e   : > { %1498 = dma.done.wait (%p1896_p8), [#allocation6], 2048   ;;  %p1897_p9 = pmov %p1896_p8 }
  0x6f   : > { %p1898_p2 = pmov %p1896_p8 }
  0x70   : > { %1500 = vsyncadd (%p1897_p9), [#allocation6], 4294965248 }
  0x71   : > { %1502 = dma.done.wait (%p1898_p2), [#allocation9], 2048   ;;  %p1899_p0 = pmov %p1898_p2 }
  0x72   : > { %v1532_v0 = vmov 0.0   ;;  %vm1533_vm0 = vmmov 0   ;;  %v1286_v1 = vld [vmem:[#allocation5 + $0x38] sm:$0xff]   ;;  %v1287_v2 = vld [vmem:[#allocation5 + $0x30] sm:$0xff]   ;;  %v1288_v3 = vld [vmem:[#allocation5 + $0x28] sm:$0xff]   ;;  %s1032_s21 = sshll.u32 %s1744_s3, 4 }
  0x73   : > { %1504 = vsyncadd (%p1899_p0), [#allocation9], 4294965248  ;;  %1113 = vmatprep.subr.bf16.mxu0 %v1532_v0  ;;  %1129 = vmatprep.mubr.msk.bf16.mxu0 %vm1533_vm0, %v1532_v0  ;;  %v1295_v4 = vld [vmem:[#allocation7 + $0x38] sm:$0xff]   ;;  %v1289_v5 = vld [vmem:[#allocation5 + $0x20] sm:$0xff]   ;;  %s408_s1 = scalar_lea.vmem [#allocation11], %s1032_s21  ;;  %s1076_s5 = sshll.u32 %s1608_s13, 8 }
  0x74   : > { %1133 = vmatprep.subr.bf16.mxu1 %v1532_v0  ;;  %1149 = vmatprep.mubr.msk.bf16.mxu1 %vm1533_vm0, %v1532_v0  ;;  %v1296_v6 = vld [vmem:[#allocation7 + $0x30] sm:$0xff]   ;;  %v1290_v7 = vld [vmem:[#allocation5 + $0x18] sm:$0xff]   ;;  %v1297_v8 = vld [vmem:[#allocation7 + $0x28] sm:$0xff]   ;;  %s905_s29 = sshll.u32 %s408_s1, 4  ;;  %s1822_s15 = scalar_lea.hbm %s1873_s9, %s1076_s5  ;;  %s1817_s29 = int_to_ptr.vmem [resolvable:$true] %s905_s29 }
  0x75   : > { %1114 = vmatpush3.bf16.msra.mxu0 %v1286_v1  ;;  %1134 = vmatpush3.bf16.msra.mxu1 %v1295_v4  ;;  %v1291_v9 = vld [vmem:[#allocation5 + $0x10] sm:$0xff]   ;;  %v1298_v10 = vld [vmem:[#allocation7 + $0x20] sm:$0xff]   ;;  %v1292_v11 = vld [vmem:[#allocation5 + $0x8] sm:$0xff]   ;;  %s892_s17 = scalar_lea.sflag [#allocation4], %s1744_s3  ;;  %s1451_s26 = scalar_lea.vmem %s1817_s29, 256 }
  0x76   : > { %1115 = vmatprep.subr.bf16.mxu0 %v1532_v0  ;;  %1135 = vmatprep.subr.bf16.mxu1 %v1532_v0  ;;  %v1299_v12 = vld [vmem:[#allocation7 + $0x18] sm:$0xff]   ;;  %v1293_v13 = vld [vmem:[#allocation5] sm:$0xff]   ;;  %v1300_v15 = vld [vmem:[#allocation7 + $0x10] sm:$0xff]   ;;  %p1452_p5 = scmp.ne.s32.totalorder %s1817_s29, %s1451_s26  ;;  %p1900_p11 = scmp.ne.s32.totalorder %s1890_s19, 0 }
  0x77   : > { %v1294_v14 = vld [vmem:[%s1748_s24] sm:$0xff]   ;;  %v1301_v16 = vld [vmem:[#allocation7 + $0x8] sm:$0xff]   ;;  %v1302_v17 = vld [vmem:[#allocation7] sm:$0xff]   ;;  %s1534_s13 = smov [#allocation11]  }
  0x78   : > { %v1303_v18 = vld [vmem:[#allocation8 + $0x38] sm:$0xff]   ;;  %v1304_v19 = vld [vmem:[#allocation8 + $0x30] sm:$0xff]   ;;  %v1305_v20 = vld [vmem:[#allocation8 + $0x28] sm:$0xff]   ;;  %p1453_p7 = pnand %p1452_p5, %p1900_p11  ;;  %s1455_s27 = sshll.u32 %s1534_s13, 4  ;;  %s1456_s27 = int_to_ptr.vmem [resolvable:$false] %s1455_s27 }
  0x79   : > { %1116 = vmatpush3.bf16.msra.mxu0 %v1287_v2  ;;  %1136 = vmatpush3.bf16.msra.mxu1 %v1296_v6  ;;  %v1306_v21 = vld [vmem:[#allocation8 + $0x20] sm:$0xff]   ;;  %v1307_v22 = vld [vmem:[#allocation8 + $0x18] sm:$0xff]   ;;  %v1033_v23 = vld [vmem:[%s1866_s2] ss:$0 sm:$0xff]  ;;  %s1457_s14 = scalar_lea.vmem %s1456_s27, 512  ;;  %p1458_p12 = scmp.lt.s32.totalorder %s1817_s29, %s1456_s27 }
  0x7a   : > { %1117 = vmatprep.subr.bf16.mxu0 %v1532_v0  ;;  %1137 = vmatprep.subr.bf16.mxu1 %v1532_v0  ;;  %v1308_v35 = vld [vmem:[#allocation8 + $0x10] sm:$0xff]   ;;  %v1309_v36 = vld [vmem:[#allocation8 + $0x8] sm:$0xff]   ;;  %v1310_v37 = vld [vmem:[#allocation8] sm:$0xff]   ;;  %p1454_p1 = pneg %p1453_p7  ;;  %p1459_p13 = scmp.lt.s32.totalorder %s1457_s14, %s1451_s26 }
  0x7b   : > { %v1311_v38 = vld [vmem:[#allocation10 + $0x38] sm:$0xff]   ;;  %v1312_v39 = vld [vmem:[#allocation10 + $0x30] sm:$0xff]   ;;  %v1313_v40 = vld [vmem:[#allocation10 + $0x28] sm:$0xff]  }
  0x7c   : > { %v1314_v41 = vld [vmem:[#allocation10 + $0x20] sm:$0xff]   ;;  %v1315_v42 = vld [vmem:[#allocation10 + $0x18] sm:$0xff]   ;;  %v1043_v43 = vld [vmem:[%s1868_s4] ss:$0 sm:$0xff]  ;;  %p1460_p10 = por %p1459_p13, %p1458_p12 }
  0x7d   : > { %1118 = vmatpush3.bf16.msra.mxu0 %v1288_v3  ;;  %1138 = vmatpush3.bf16.msra.mxu1 %v1297_v8  ;;  %v1316_v55 = vld [vmem:[#allocation10 + $0x10] sm:$0xff]   ;;  %v1317_v56 = vld [vmem:[#allocation10 + $0x8] sm:$0xff]   ;;  %v1318_v57 = vld [vmem:[#allocation10] sm:$0xff]  }
  0x7e   : > { %1119 = vmatprep.subr.bf16.mxu0 %v1532_v0  ;;  %1139 = vmatprep.subr.bf16.mxu1 %v1532_v0  ;;  %v1052_v58 = vld [vmem:[%s1870_s6] ss:$0 sm:$0xff]  ;;  %p1461_p3 = pnand %p1460_p10, %p1454_p1 }
  0x7f   : > { %v1061_v6 = vld [vmem:[%s1872_s8] ss:$0 sm:$0xff] }
  0x81   : > { %1120 = vmatpush3.bf16.msra.mxu0 %v1289_v5  ;;  %1140 = vmatpush3.bf16.msra.mxu1 %v1298_v10 }
  0x82   : > { %1121 = vmatprep.subr.bf16.mxu0 %v1532_v0  ;;  %1141 = vmatprep.subr.bf16.mxu1 %v1532_v0 }
  0x85   : > { %1122 = vmatpush3.bf16.msra.mxu0 %v1290_v7  ;;  %1142 = vmatpush3.bf16.msra.mxu1 %v1299_v12 }
  0x86   : > { %1123 = vmatprep.subr.bf16.mxu0 %v1532_v0  ;;  %1143 = vmatprep.subr.bf16.mxu1 %v1532_v0 }
  0x89   : > { %1124 = vmatpush3.bf16.msra.mxu0 %v1291_v9  ;;  %1144 = vmatpush3.bf16.msra.mxu1 %v1300_v15 }
  0x8a   : > { %1125 = vmatprep.subr.bf16.mxu0 %v1532_v0  ;;  %1145 = vmatprep.subr.bf16.mxu1 %v1532_v0 }
  0x8d   : > { %1126 = vmatpush3.bf16.msra.mxu0 %v1292_v11  ;;  %1146 = vmatpush3.bf16.msra.mxu1 %v1301_v16 }
  0x8e   : > { %1127 = vmatprep.subr.bf16.mxu0 %v1532_v0  ;;  %1147 = vmatprep.subr.bf16.mxu1 %v1532_v0 }
  0x91   : > { %1128 = vmatpush3.bf16.msra.mxu0 %v1293_v13  ;;  %1148 = vmatpush3.bf16.msra.mxu1 %v1302_v17 }
  0x92   : > { %1153 = vmatprep.subr.bf16.mxu0 %v1532_v0  ;;  %1173 = vmatprep.subr.bf16.mxu1 %v1532_v0 }
  0x94   : > { %1130 = vmatmul.mubr.bf16.vlgmr.msra.gmra.mxu0 %v1294_v14 }
  0x95   : > { %1169 = vmatprep.mubr.msk.bf16.mxu0 %vm1533_vm0, %v1532_v0  ;;  %1154 = vmatpush3.bf16.msra.mxu0 %v1303_v18 }
  0x96   : > { %1155 = vmatprep.subr.bf16.mxu0 %v1532_v0 }
  0x99   : > { %1156 = vmatpush3.bf16.msra.mxu0 %v1304_v19 }
  0x9a   : > { %1157 = vmatprep.subr.bf16.mxu0 %v1532_v0 }
  0x9d   : > { %1158 = vmatpush3.bf16.msra.mxu0 %v1305_v20 }
  0x9e   : > { %1159 = vmatprep.subr.bf16.mxu0 %v1532_v0 }
  0xa1   : > { %1160 = vmatpush3.bf16.msra.mxu0 %v1306_v21 }
  0xa2   : > { %1161 = vmatprep.subr.bf16.mxu0 %v1532_v0 }
  0xa5   : > { %1162 = vmatpush3.bf16.msra.mxu0 %v1307_v22 }
  0xa6   : > { %1163 = vmatprep.subr.bf16.mxu0 %v1532_v0 }
  0xa9   : > { %1164 = vmatpush3.bf16.msra.mxu0 %v1308_v35 }
  0xaa   : > { %1165 = vmatprep.subr.bf16.mxu0 %v1532_v0 }
  0xad   : > { %1166 = vmatpush3.bf16.msra.mxu0 %v1309_v36 }
  0xae   : > { %1167 = vmatprep.subr.bf16.mxu0 %v1532_v0 }
  0xb1   : > { %1168 = vmatpush3.bf16.msra.mxu0 %v1310_v37 }
 0x154   : > { %v525_v24 = vpop.f32.mrf.mxu0 }
 0x155   : > { %v526_v25 = vadd.f32 %v1033_v23, %v525_v24 }
 0x156   : > { %v1131_v26 = vpop.f32.mrf.mxu0 }
 0x157   : > { %v534_v28 = vmul.f32 0.01, %v526_v25  ;;  %vm532_vm1 = vcmp.gt.f32.partialorder %v526_v25, 0.0 }
 0x158   : > { %v528_v27 = vpop.f32.mrf.mxu0 }
 0x159   : > { %v529_v29 = vadd.f32 %v1033_v23, %v528_v27  ;;  %v536_v32 = vsel %vm532_vm1, %v526_v25, %v534_v28 }
 0x15a   : > { %v1132_v30 = vpop.f32.mrf.mxu0 }
 0x15b   : > { %vm533_vm2 = vcmp.gt.f32.partialorder %v529_v29, 0.0  ;;  %v535_v31 = vmul.f32 0.01, %v529_v29 }
 0x15d   : > { %v537_v33 = vsel %vm533_vm2, %v529_v29, %v535_v31 }
 0x15e   : > { %v538_v34 = vpack.c.bf16 %v537_v33, %v536_v32 }
 0x160   : > { %1150 = vmatmul.mubr.bf16.vlgmr.msra.gmra.mxu1 %v538_v34 }
 0x161   : > { %1189 = vmatprep.mubr.msk.bf16.mxu1 %vm1533_vm0, %v1532_v0  ;;  %1174 = vmatpush3.bf16.msra.mxu1 %v1311_v38 }
 0x162   : > { %1175 = vmatprep.subr.bf16.mxu1 %v1532_v0 }
 0x165   : > { %1176 = vmatpush3.bf16.msra.mxu1 %v1312_v39 }
 0x166   : > { %1177 = vmatprep.subr.bf16.mxu1 %v1532_v0 }
 0x169   : > { %1178 = vmatpush3.bf16.msra.mxu1 %v1313_v40 }
 0x16a   : > { %1179 = vmatprep.subr.bf16.mxu1 %v1532_v0 }
 0x16d   : > { %1180 = vmatpush3.bf16.msra.mxu1 %v1314_v41 }
 0x16e   : > { %1181 = vmatprep.subr.bf16.mxu1 %v1532_v0 }
 0x171   : > { %1182 = vmatpush3.bf16.msra.mxu1 %v1315_v42 }
 0x172   : > { %1183 = vmatprep.subr.bf16.mxu1 %v1532_v0 }
 0x175   : > { %1184 = vmatpush3.bf16.msra.mxu1 %v1316_v55 }
 0x176   : > { %1185 = vmatprep.subr.bf16.mxu1 %v1532_v0 }
 0x179   : > { %1186 = vmatpush3.bf16.msra.mxu1 %v1317_v56 }
 0x17a   : > { %1187 = vmatprep.subr.bf16.mxu1 %v1532_v0 }
 0x17d   : > { %1188 = vmatpush3.bf16.msra.mxu1 %v1318_v57 }
 0x220   : > { %v644_v44 = vpop.f32.mrf.mxu1 }
 0x221   : > { %v645_v45 = vadd.f32 %v1043_v43, %v644_v44 }
 0x222   : > { %v1151_v46 = vpop.f32.mrf.mxu1 }
 0x223   : > { %v653_v48 = vmul.f32 0.01, %v645_v45  ;;  %vm651_vm3 = vcmp.gt.f32.partialorder %v645_v45, 0.0 }
 0x224   : > { %v647_v47 = vpop.f32.mrf.mxu1 }
 0x225   : > { %v648_v49 = vadd.f32 %v1043_v43, %v647_v47  ;;  %v655_v52 = vsel %vm651_vm3, %v645_v45, %v653_v48 }
 0x226   : > { %v1152_v50 = vpop.f32.mrf.mxu1 }
 0x227   : > { %vm652_vm4 = vcmp.gt.f32.partialorder %v648_v49, 0.0  ;;  %v654_v51 = vmul.f32 0.01, %v648_v49 }
 0x229   : > { %v656_v53 = vsel %vm652_vm4, %v648_v49, %v654_v51 }
 0x22a   : > { %v657_v54 = vpack.c.bf16 %v656_v53, %v655_v52 }
 0x22c   : > { %1170 = vmatmul.mubr.bf16.vlgmr.msra.gmra.mxu0 %v657_v54 }
 0x2ec   : > { %v763_v59 = vpop.f32.mrf.mxu0 }
 0x2ed   : > { %v764_v60 = vadd.f32 %v1052_v58, %v763_v59 }
 0x2ee   : > { %v1171_v61 = vpop.f32.mrf.mxu0 }
 0x2ef   : > { %v772_v63 = vmul.f32 0.01, %v764_v60  ;;  %vm770_vm5 = vcmp.gt.f32.partialorder %v764_v60, 0.0 }
 0x2f0   : > { %v766_v62 = vpop.f32.mrf.mxu0 }
 0x2f1   : > { %v767_v1 = vadd.f32 %v1052_v58, %v766_v62  ;;  %v774_v4 = vsel %vm770_vm5, %v764_v60, %v772_v63 }
 0x2f2   : > { %v1172_v2 = vpop.f32.mrf.mxu0 }
 0x2f3   : > { %vm771_vm6 = vcmp.gt.f32.partialorder %v767_v1, 0.0  ;;  %v773_v3 = vmul.f32 0.01, %v767_v1 }
 0x2f5   : > { %v775_v0 = vsel %vm771_vm6, %v767_v1, %v773_v3 }
 0x2f6   : > { %v776_v5 = vpack.c.bf16 %v775_v0, %v774_v4 }
 0x2f8   : > { %1190 = vmatmul.mubr.bf16.vlgmr.msra.gmra.mxu1 %v776_v5 }
 0x3b8   : > { %v882_v7 = vpop.f32.mrf.mxu1 }
 0x3b9   : > { %v883_v8 = vadd.f32 %v1061_v6, %v882_v7 }
 0x3ba   : > { %v1191_v9 = vpop.f32.mrf.mxu1 }
 0x3bb   : > { %889 = vst [vmem:[%s408_s1] sm:$0xff] %v883_v8 }
 0x3bc   : > { %v885_v10 = vpop.f32.mrf.mxu1 }
 0x3bd   : > { %v886_v11 = vadd.f32 %v1061_v6, %v885_v10 }
 0x3be   : > { %v1192_v12 = vpop.f32.mrf.mxu1 }
 0x3bf   : > { %890 = vst [vmem:[%s408_s1 + $0x8] sm:$0xff] %v886_v11 }
 0x3c0   : > { %1464 = shalt.err (!%p1461_p3)
}
 0x3c1   : > { %s1465_s20 = scalar_lea.hbm %s1822_s15, 256  ;;  %s1469_s28 = scalar_lea.hbm %s1873_s9, 768 }
 0x3c2   : > { %p1466_p6 = scmp.ne.s32.totalorder %s1822_s15, %s1465_s20  ;;  %p1470_p9 = scmp.lt.s32.totalorder %s1822_s15, %s1873_s9 }
 0x3c3   : > { %p1471_p2 = scmp.lt.s32.totalorder %s1469_s28, %s1465_s20 }
 0x3c4   : > { %p1467_p4 = pnand %p1466_p6, %p1900_p11 }
 0x3c5   : > { %p1472_p0 = por %p1471_p2, %p1470_p9 }
 0x3c6   : > { %p1468_p8 = pneg %p1467_p4 }
 0x3c8   : > { %p1473_p5 = pnand %p1472_p0, %p1468_p8 }
 0x3ca   : > { %1476 = shalt.err (!%p1473_p5)
}
 0x3cb   : > { %s1535_s22 = smov 128   ;;  %s1536_s24 = smov 8  }
 0x3cc   : > { %1211 = dma.vmem_to_hbm [thread:$0]  (%p1900_p11), %s1817_s29, 256, %s1822_s15, %s892_s17, %s1535_s22, %s1535_s22, %s1536_s24  }
 0x3cd PF: > { %p1243_p7 = scmp.ge.s32.totalorder %s1523_s12, 2  ;;  %s920_s26 = sand.u32 1, %s1511_s30  }
 0x3ce   : > { %p1901_p1 = scmp.ne.s32.totalorder %s1884_s16, 0  ;;  %s921_s13 = scalar_lea.sflag [#allocation4], %s920_s26 }
 0x3d0   : > { %p1231_p12 = pnand %p1243_p7, %p1901_p1 }
 0x3d2   : > { %p1232_p13 = pneg %p1231_p12 }
 0x3d4   : > { %1506 = dma.done.wait (%p1232_p13), %s921_s13, 256  }
 0x3d5   : > { %1508 = vsyncadd (%p1232_p13), %s921_s13, 4294967040  ;;  %p24_p10 = scmp.ge.s32.totalorder %s1686_s18, 5   ;;  %s1902_s30 = smov %s1515_s10 }
 0x3d6   : > { %s1903_s10 = smov %s1519_s11  ;;  %s1904_s11 = smov %s1702_s23 }
 0x3d7   : > { %s1905_s12 = smov %s1686_s18  ;;  %26 = sbr.rel (!%p24_p10) target bundleno = 11 (0xb), region = 117 }
 0x3dc   :  { %926 = vsyncpa [#allocation3], 1 }
 0x3dd   :  { %928 = vsyncpa [#allocation3 + $0x1], 1 }
 0x3de   :  { %929 = vsyncpa [#allocation6], 1 }
 0x3df   :  { %930 = vsyncpa [#allocation9], 1 }
 0x3e0   :  { %931 = vsyncpa [#allocation4], 1 }
 0x3e1   :  { %933 = vsyncpa [#allocation4 + $0x1], 1 }

</bundles_post_ra>
